<compile_context>
chip_gen: v7x
topology: tpu7x:2x2x1
jax: 0.10.0
libtpu: 0.0.40
codegen_flags: <defaults>
</compile_context>

<pallas_src>
import functools

import jax
import jax.numpy as jnp
from jax import lax
from jax.experimental import pallas as pl
from jax.experimental.pallas import tpu as pltpu


def _round_up(x, m):
    return (x + m - 1) // m * m


def _sq_partial_kernel(*refs, rows_tile, total_rows, use_weight):
    """Per-grid-step partial sum of squared (optionally weighted) errors.

    Block layouts:
      pred/gt : (rows_tile, HW)   rows = flattened (batch, joint)
      weight  : (rows_tile, 1)    only when use_weight
      out     : (1, 8, 128)       lane-dense per-step partial
    """
    if use_weight:
        pred_ref, gt_ref, w_ref, out_ref = refs
    else:
        pred_ref, gt_ref, out_ref = refs

    p = pred_ref[...].astype(jnp.float32)
    g = gt_ref[...].astype(jnp.float32)
    d = p - g
    # Reduce over HW first; the per-row weight is applied afterwards:
    #   sum_hw(((p - g) * w)^2) == w^2 * sum_hw((p - g)^2)
    row_sums = jnp.sum(d * d, axis=-1, keepdims=True)            # (rows_tile, 1)
    if use_weight:
        w = w_ref[...].astype(jnp.float32)                       # (rows_tile, 1)
        row_sums = row_sums * (w * w)

    # Mask rows of the (possibly ragged) last tile.  jnp.where *selects*, so any
    # garbage (inf/NaN) in the out-of-range rows is discarded, not propagated.
    row0 = pl.program_id(0) * rows_tile
    row_ids = row0 + lax.broadcasted_iota(jnp.int32, (rows_tile, 1), 0)
    row_sums = jnp.where(row_ids < total_rows, row_sums, 0.0)

    partial = jnp.sum(row_sums)
    # Full, unmasked lane-dense store of this step's partial.
    out_ref[...] = jnp.zeros(out_ref.shape, jnp.float32) + partial


def _vmem_capacity_bytes():
    """Per-core VMEM capacity; falls back to the smallest generation (v7x)."""
    try:
        cap = int(pltpu.get_tpu_info().vmem_capacity_bytes)
        if cap > 0:
            return cap
    except Exception:
        pass
    return 64 * 1024 * 1024


def joints_mse_loss(output, target, target_weight, use_target_weight=True,
                    block_bytes=6 * 1024 * 1024):
    """output/target: (B, J, H, W); target_weight: (B, J, 1). Returns scalar loss."""
    B, J, H, W = output.shape
    HW = H * W
    R = B * J                                        # flattened (batch, joint) rows

    pred = output.reshape(R, HW)                     # free reshapes, native dtype
    gt = target.reshape(R, HW)                       # (cast to f32 in-kernel)

    itemsize = max(jnp.dtype(pred.dtype).itemsize, jnp.dtype(gt.dtype).itemsize)
    row_bytes = HW * itemsize

    # Generation-aware block budget: 2 inputs x 2 pipeline buffers x block must
    # stay well within VMEM (v7x has only 64 MiB per TensorCore).
    vmem_cap = _vmem_capacity_bytes()
    block_budget = max(row_bytes, min(block_bytes, (vmem_cap * 3 // 4) // 4))

    rows_tile = max(8, (block_budget // row_bytes) // 8 * 8)
    rows_tile = min(rows_tile, _round_up(R, 8))
    # Keep >= 2 parallel grid steps whenever possible so both v7x TensorCores
    # participate in the HBM stream (no effect when R <= 8 or already multi-step).
    if R > 8 and pl.cdiv(R, rows_tile) < 2:
        rows_tile = max(8, _round_up(pl.cdiv(R, 2), 8))
    num_steps = pl.cdiv(R, rows_tile)
    # TODO(synk): if a single row (HW * itemsize) ever exceeded the block budget
    # (~1.5M-element heatmaps), add a second grid axis chunking HW.

    block_in_bytes = rows_tile * HW * itemsize
    vmem_needed = (4 * block_in_bytes                 # 2 heatmap inputs x 2 buffers
                   + 2 * rows_tile * 128 * 4          # weight buffers (lane-padded)
                   + 2 * 8 * 128 * 4)                 # output buffers
    vmem_limit = int(min(max(32 << 20, vmem_needed + (4 << 20)),
                         vmem_cap - (8 << 20)))

    hm_spec = pl.BlockSpec((rows_tile, HW), lambda i: (i, 0))
    out_shape = jax.ShapeDtypeStruct((num_steps, 8, 128), jnp.float32)
    out_spec = pl.BlockSpec((1, 8, 128), lambda i: (i, 0, 0))

    compiler_params = pltpu.CompilerParams(
        dimension_semantics=("parallel",),
        vmem_limit_bytes=vmem_limit,
    )

    bytes_accessed = (pred.size * jnp.dtype(pred.dtype).itemsize
                      + gt.size * jnp.dtype(gt.dtype).itemsize
                      + num_steps * 8 * 128 * 4)
    flops = 3 * R * HW + 2 * R

    kernel = functools.partial(_sq_partial_kernel, rows_tile=rows_tile,
                               total_rows=R, use_weight=use_target_weight)

    if use_target_weight:
        w = target_weight.reshape(R, 1)
        bytes_accessed += w.size * jnp.dtype(w.dtype).itemsize
        in_specs = [hm_spec, hm_spec,
                    pl.BlockSpec((rows_tile, 1), lambda i: (i, 0))]
        args = (pred, gt, w)
    else:
        in_specs = [hm_spec, hm_spec]
        args = (pred, gt)

    partials = pl.pallas_call(
        kernel,
        out_shape=out_shape,
        grid=(num_steps,),
        in_specs=in_specs,
        out_specs=out_spec,
        compiler_params=compiler_params,
        cost_estimate=pl.CostEstimate(
            flops=flops, transcendentals=0, bytes_accessed=bytes_accessed),
    )(*args)

    sumsq = jnp.sum(partials[:, 0, 0])               # one partial per grid step
    # Per joint: 0.5 * mean over (B * HW); final: sum over joints / J.
    return sumsq * 0.5 / (B * HW) / J


def joints_mse_loss_ref(output, target, target_weight, use_target_weight=True):
    """Pure-JAX reference mirroring the PyTorch loop semantics."""
    B, J, H, W = output.shape
    pred = output.reshape(B, J, -1).astype(jnp.float32)
    gt = target.reshape(B, J, -1).astype(jnp.float32)
    loss = 0.0
    for idx in range(J):
        hp = pred[:, idx, :]
        hg = gt[:, idx, :]
        if use_target_weight:
            wj = target_weight[:, idx].astype(jnp.float32)   # (B, 1)
            loss = loss + 0.5 * jnp.mean((hp * wj - hg * wj) ** 2)
        else:
            loss = loss + 0.5 * jnp.mean((hp - hg) ** 2)
    return loss / J


if __name__ == "__main__":
    key = jax.random.PRNGKey(0)

    # Case 1: small, even shapes (single grid step).
    B, J, H, W = 2, 4, 16, 16
    k1, k2, k3, k4 = jax.random.split(key, 4)
    output = jax.random.normal(k1, (B, J, H, W), dtype=jnp.float32)
    target = jax.random.normal(k2, (B, J, H, W), dtype=jnp.float32)
    target_weight = jax.random.uniform(k3, (B, J, 1), dtype=jnp.float32)

    loss = jax.block_until_ready(
        joints_mse_loss(output, target, target_weight, use_target_weight=True))
    ref = joints_mse_loss_ref(output, target, target_weight, use_target_weight=True)
    assert jnp.allclose(loss, ref, rtol=1e-5, atol=1e-6), (loss, ref)

    # Unweighted path (specialized kernel: no weight stream, no multiply).
    loss_nw = jax.block_until_ready(
        joints_mse_loss(output, target, target_weight, use_target_weight=False))
    ref_nw = joints_mse_loss_ref(output, target, target_weight, use_target_weight=False)
    assert jnp.allclose(loss_nw, ref_nw, rtol=1e-5, atol=1e-6), (loss_nw, ref_nw)

    # Case 2: B*J not a multiple of the row tile -> exercises the cdiv grid,
    # the >=2-parallel-step rule, and ragged-row masking in the last tile.
    B2, J2 = 3, 5
    k5, k6, k7 = jax.random.split(k4, 3)
    output2 = jax.random.normal(k5, (B2, J2, H, W), dtype=jnp.float32)
    target2 = jax.random.normal(k6, (B2, J2, H, W), dtype=jnp.float32)
    target_weight2 = jax.random.uniform(k7, (B2, J2, 1), dtype=jnp.float32)

    loss2 = jax.block_until_ready(
        joints_mse_loss(output2, target2, target_weight2, use_target_weight=True))
    ref2 = joints_mse_loss_ref(output2, target2, target_weight2, use_target_weight=True)
    assert jnp.allclose(loss2, ref2, rtol=1e-5, atol=1e-6), (loss2, ref2)

    print("KERNEL_OK")
</pallas_src>

<mosaic_0001>
module attributes {stable_mosaic.version = 11 : i64} {
  func.func @_sq_partial_kernel(%arg0: i32, %arg1: memref<8x256xf32, #tpu.memory_space<vmem>>, %arg2: memref<8x256xf32, #tpu.memory_space<vmem>>, %arg3: memref<8x1xf32, #tpu.memory_space<vmem>>, %arg4: memref<1x8x128xf32, #tpu.memory_space<vmem>>) attributes {dimension_semantics = [#tpu.dimension_semantics<parallel>], iteration_bounds = array<i64: 1>, scalar_prefetch = 0 : i64, scratch_operands = 0 : i64, tpu.core_type = #tpu.core_type<tc>, window_params = [{transform_indices = @transform_0, window_bounds = array<i64: 8, 256>}, {transform_indices = @transform_1, window_bounds = array<i64: 8, 256>}, {transform_indices = @transform_2, window_bounds = array<i64: 8, 1>}, {transform_indices = @transform_3, window_bounds = array<i64: 1, 8, 128>}]} {
    %c0 = arith.constant 0 : index
    %c0_0 = arith.constant 0 : index
    %0 = vector.load %arg1[%c0, %c0_0] : memref<8x256xf32, #tpu.memory_space<vmem>>, vector<8x256xf32>
    %c0_1 = arith.constant 0 : index
    %c0_2 = arith.constant 0 : index
    %1 = vector.load %arg2[%c0_1, %c0_2] : memref<8x256xf32, #tpu.memory_space<vmem>>, vector<8x256xf32>
    %2 = arith.subf %0, %1 : vector<8x256xf32>
    %3 = arith.mulf %2, %2 : vector<8x256xf32>
    %cst = arith.constant dense<0.000000e+00> : vector<8xf32>
    %4 = vector.multi_reduction <add>, %3, %cst [1] : vector<8x256xf32> to vector<8xf32>
    %5 = vector.shape_cast %4 : vector<8xf32> to vector<8x1xf32>
    %c0_3 = arith.constant 0 : index
    %c0_4 = arith.constant 0 : index
    %6 = vector.load %arg3[%c0_3, %c0_4] : memref<8x1xf32, #tpu.memory_space<vmem>>, vector<8x1xf32>
    %7 = arith.mulf %6, %6 : vector<8x1xf32>
    %8 = arith.mulf %5, %7 : vector<8x1xf32>
    %c8_i32 = arith.constant 8 : i32
    %9 = arith.muli %arg0, %c8_i32 : i32
    %10 = tpu.iota {dimensions = array<i32: 0>} : vector<8x1xi32>
    %11 = vector.broadcast %9 : i32 to vector<8x1xi32>
    %12 = arith.addi %11, %10 : vector<8x1xi32>
    %c8_i32_5 = arith.constant 8 : i32
    %13 = vector.broadcast %c8_i32_5 : i32 to vector<8x1xi32>
    %14 = arith.cmpi slt, %12, %13 : vector<8x1xi32>
    %cst_6 = arith.constant 0.000000e+00 : f32
    %15 = vector.broadcast %cst_6 : f32 to vector<8x1xf32>
    %16 = arith.select %14, %8, %15 : vector<8x1xi1>, vector<8x1xf32>
    %17 = vector.shape_cast %16 : vector<8x1xf32> to vector<1x8x1xf32>
    %cst_7 = arith.constant dense<0.000000e+00> : vector<1xf32>
    %18 = vector.multi_reduction <add>, %17, %cst_7 [1, 2] : vector<1x8x1xf32> to vector<1xf32>
    %19 = vector.shape_cast %18 : vector<1xf32> to vector<1x1x1xf32>
    %20 = vector.extract %19[0, 0, 0] : f32 from vector<1x1x1xf32>
    %cst_8 = arith.constant 0.000000e+00 : f32
    %21 = vector.broadcast %cst_8 : f32 to vector<1x8x128xf32>
    %22 = vector.broadcast %20 : f32 to vector<1x8x128xf32>
    %23 = arith.addf %21, %22 : vector<1x8x128xf32>
    %c0_9 = arith.constant 0 : index
    %c0_10 = arith.constant 0 : index
    %c0_11 = arith.constant 0 : index
    %24 = vector.load %arg4[%c0_9, %c0_10, %c0_11] : memref<1x8x128xf32, #tpu.memory_space<vmem>>, vector<1x8x128xf32>
    tpu.vector_store %arg4[%c0_9, %c0_10, %c0_11], %23 {strides = array<i32>} : memref<1x8x128xf32, #tpu.memory_space<vmem>>, vector<1x8x128xf32>,
    return
  }
  func.func @transform_0(%arg0: i32) -> (i32, i32) {
    %c0_i32 = arith.constant 0 : i32
    %c0_i32_0 = arith.constant 0 : i32
    return %arg0, %c0_i32 : i32, i32
  }
  func.func @transform_1(%arg0: i32) -> (i32, i32) {
    %c0_i32 = arith.constant 0 : i32
    %c0_i32_0 = arith.constant 0 : i32
    return %arg0, %c0_i32 : i32, i32
  }
  func.func @transform_2(%arg0: i32) -> (i32, i32) {
    %c0_i32 = arith.constant 0 : i32
    %c0_i32_0 = arith.constant 0 : i32
    return %arg0, %c0_i32 : i32, i32
  }
  func.func @transform_3(%arg0: i32) -> (i32, i32, i32) {
    %c0_i32 = arith.constant 0 : i32
    %c0_i32_0 = arith.constant 0 : i32
    %c0_i32_1 = arith.constant 0 : i32
    return %arg0, %c0_i32, %c0_i32_0 : i32, i32, i32
  }
}

</mosaic_0001>

<bundles_post_ra>
// kernel: tpu_custom_call.1
= control target key start
LH: loop header
LB: loop body
LE: loop exit
PB: predicated region body
PF: predicated region fallthrough
CT: control target
= control target key end

     0   :  { %8 = vsyncpa [#allocation3], 0  ;;  %s229_s0 = inlined_call_operand.hbm [shape: f32[8,256], index: 0, kind: input, shape index: {}]   ;;  %s230_s1 = inlined_call_operand.hbm [shape: f32[8,256], index: 1, kind: input, shape index: {}]   ;;  %s231_s2 = inlined_call_operand.vmem [shape: f32[8,1], index: 2, kind: input, shape index: {}]   ;;  %s232_s3 = inlined_call_operand.hbm [shape: f32[1,8,128], index: 3, kind: output, shape index: {}]  }
   0x1   :  { %9 = vsyncpa [#allocation6], 0 }
   0x2   :  { %10 = vsyncpa [#allocation4], 0  ;;  %s167_s12 = smov [#allocation2]   ;;  %s168_s14 = smov [#allocation5]  }
   0x3   :  { %s17_s13 = sshll.u32 %s167_s12, 4  ;;  %s27_s15 = sshll.u32 %s168_s14, 4  ;;  %s18_s13 = int_to_ptr.vmem [resolvable:$true] %s17_s13  ;;  %s28_s15 = int_to_ptr.vmem [resolvable:$true] %s27_s15 }
   0x4   :  { %s95_s18 = scalar_lea.hbm %s229_s0, 256 }
   0x5   :  { %p96_p0 = scmp.ne.s32.totalorder %s229_s0, %s95_s18  ;;  %p99_p1 = scmp.lt.u32.totalorder %s95_s18, %s229_s0 }
   0x7   :  { %p101_p2 = pnand %p99_p1, %p96_p0 }
   0x9   :  { %104 = shalt.err (!%p101_p2)
}
   0xa   :  { %s105_s23 = scalar_lea.vmem %s18_s13, 256  ;;  %p110_p4 = scmp.lt.s32.totalorder %s18_s13, %s18_s13 }
   0xb   :  { %p106_p3 = scmp.ne.s32.totalorder %s18_s13, %s105_s23  ;;  %p111_p5 = scmp.lt.s32.totalorder %s105_s23, %s105_s23 }
   0xd   :  { %p112_p6 = por %p111_p5, %p110_p4 }
   0xf   :  { %p113_p7 = pnand %p112_p6, %p106_p3 }
  0x11   :  { %116 = shalt.err (!%p113_p7)
}
  0x12   :  { %20 = dma.hbm_to_vmem [thread:$0]  %s229_s0, 256, %s18_s13, [#allocation3]  }
  0x13   :  { %s117_s28 = scalar_lea.hbm %s230_s1, 256 }
  0x14   :  { %p118_p8 = scmp.ne.s32.totalorder %s230_s1, %s117_s28  ;;  %p121_p9 = scmp.lt.u32.totalorder %s117_s28, %s230_s1 }
  0x16   :  { %p123_p10 = pnand %p121_p9, %p118_p8 }
  0x18   :  { %126 = shalt.err (!%p123_p10)
}
  0x19   :  { %s127_s6 = scalar_lea.vmem %s28_s15, 256  ;;  %p132_p12 = scmp.lt.s32.totalorder %s28_s15, %s28_s15 }
  0x1a   :  { %p128_p11 = scmp.ne.s32.totalorder %s28_s15, %s127_s6  ;;  %p133_p13 = scmp.lt.s32.totalorder %s127_s6, %s127_s6 }
  0x1c   :  { %p134_p0 = por %p133_p13, %p132_p12 }
  0x1e   :  { %p135_p1 = pnand %p134_p0, %p128_p11 }
  0x20   :  { %138 = shalt.err (!%p135_p1)
}
  0x21   :  { %30 = dma.hbm_to_vmem [thread:$0]  %s230_s1, 256, %s28_s15, [#allocation6]  }
  0x22   :  { %161 = dma.done.wait [#allocation3], 256  }
  0x23   :  { %162 = vsyncadd [#allocation3], 4294967040 }
  0x24   :  { %163 = dma.done.wait [#allocation6], 256  }
  0x25   :  { %164 = vsyncadd [#allocation6], 4294967040  ;;  %v39_v0 = vld [vmem:[#allocation2] sm:$0xff]  ;;  %v40_v1 = vld [vmem:[#allocation2 + $0x8] sm:$0xff]  ;;  %vm60_vm0 = vcmask 7168   ;;  %s169_s1 = smov [#allocation7]  }
  0x26   :  { %v41_v2 = vld [vmem:[#allocation5] sm:$0xff]  ;;  %v42_v3 = vld [vmem:[#allocation5 + $0x8] sm:$0xff]  ;;  %v50_v9 = vld [vmem:[%s231_s2] sm:$0xff]  ;;  %s80_s10 = sshll.u32 %s169_s1, 4  ;;  %s81_s10 = int_to_ptr.vmem [resolvable:$true] %s80_s10 }
  0x27   :  { %v43_v4 = vsub.f32 %v39_v0, %v41_v2  ;;  %v44_v5 = vsub.f32 %v40_v1, %v42_v3  ;;  %v51_v10 = vmul.f32 %v50_v9, %v50_v9  ;;  %s139_s2 = scalar_lea.vmem %s81_s10, 128  ;;  %p144_p3 = scmp.lt.s32.totalorder %s81_s10, %s81_s10 }
  0x28   :  { %p140_p2 = scmp.ne.s32.totalorder %s81_s10, %s139_s2  ;;  %p145_p4 = scmp.lt.s32.totalorder %s139_s2, %s139_s2 }
  0x29   :  { %v45_v6 = vmul.f32 %v43_v4, %v43_v4  ;;  %v46_v7 = vmul.f32 %v44_v5, %v44_v5 }
  0x2a   :  { %p146_p5 = por %p145_p4, %p144_p3 }
  0x2b   :  { %v47_v8 = vadd.f32 %v46_v7, %v45_v6 }
  0x2c   :  { %p147_p6 = pnand %p146_p5, %p140_p2 }
  0x2d   :  { %48 = vadd.xlane.f32.xlu0 %v47_v8 }
  0xba   :  { %v49_v11 = vpop.xlane.xlu0 %48 }
  0xbb   :  { %v52_v12 = vmul.f32 %v51_v10, %v49_v11 }
  0xbd   :  { %v61_v13 = vsel %vm60_vm0, %v52_v12, 0.0 }
  0xbe   :  { %62 = vadd.xlane.f32.xlu0 %v61_v13 }
 0x14b   :  { %v63_v14 = vpop.xlane.xlu0 %62 }
 0x14c   :  { %v64_v15 = vrot.slane %v63_v14, 4 }
 0x14e   :  { %v65_v16 = vadd.f32 %v64_v15, %v63_v14 }
 0x150   :  { %v66_v17 = vrot.slane %v65_v16, 2 }
 0x152   :  { %v67_v18 = vadd.f32 %v66_v17, %v65_v16 }
 0x154   :  { %v68_v19 = vrot.slane %v67_v18, 1 }
 0x156   :  { %v69_v20 = vadd.f32 %v68_v19, %v67_v18 }
 0x158   :  { %90 = vpush %v69_v20 }
 0x189   :  { %s91_s11 = spop %90 }
 0x18a   :  { %v71_v21 = vstv %s91_s11 }
 0x18b   :  { %73 = vst [vmem:[#allocation7] sm:$0xff] %v71_v21 }
 0x18c   :  { %150 = shalt.err (!%p147_p6)
}
 0x18d   :  { %s151_s14 = scalar_lea.hbm %s232_s3, 128 }
 0x18e   :  { %p152_p7 = scmp.ne.s32.totalorder %s232_s3, %s151_s14  ;;  %p155_p8 = scmp.lt.u32.totalorder %s151_s14, %s232_s3 }
 0x190   :  { %p157_p9 = pnand %p155_p8, %p152_p7 }
 0x192   :  { %160 = shalt.err (!%p157_p9)
}
 0x193   :  { %83 = dma.vmem_to_hbm [thread:$0]  %s81_s10, 128, %s232_s3, [#allocation4]  }
 0x194   :  { %165 = dma.done.wait [#allocation4], 128  }
 0x195   :  { %166 = vsyncadd [#allocation4], 4294967168 }
 0x196   :  { %87 = vsyncpa [#allocation3], 1 }
 0x197   :  { %88 = vsyncpa [#allocation6], 1 }
 0x198   :  { %89 = vsyncpa [#allocation4], 1 }

</bundles_post_ra>
